<compile_context>
chip_gen: v6e
topology: v6e:2x2x1
jax: 0.10.0
libtpu: 0.0.40
codegen_flags: <defaults>
</compile_context>

<pallas_src>
import functools

import jax
import jax.numpy as jnp
from jax.experimental import pallas as pl
from jax.experimental.pallas import tpu as pltpu


# ---------------------------------------------------------------------------
# Kernels
# ---------------------------------------------------------------------------

def _rmsnorm_kernel(x_ref, w_ref, o_ref, *, eps, inv_hidden):
    # Everything in float32 (matches the torch impl which does .float()).
    x = x_ref[...].astype(jnp.float32)                       # (tm, H)
    w = w_ref[...].astype(jnp.float32)                       # (1, H)
    # sum * (1/H): cross-lane sum on the XLU, constant multiply on the VALU.
    ms = jnp.sum(x * x, axis=-1, keepdims=True) * inv_hidden  # (tm, 1)
    rstd = jax.lax.rsqrt(ms + eps)                            # EUP
    o_ref[...] = (x * rstd * w).astype(o_ref.dtype)


def _rmsnorm_residual_kernel(x_ref, r_ref, w_ref, o_ref, *, eps, inv_hidden):
    x = x_ref[...].astype(jnp.float32) + r_ref[...].astype(jnp.float32)
    w = w_ref[...].astype(jnp.float32)
    ms = jnp.sum(x * x, axis=-1, keepdims=True) * inv_hidden
    rstd = jax.lax.rsqrt(ms + eps)
    o_ref[...] = (x * rstd * w).astype(o_ref.dtype)


# ---------------------------------------------------------------------------
# Tile selection (generation-aware)
# ---------------------------------------------------------------------------

def _round_up(v, m):
    return (v + m - 1) // m * m


def _sublane_granule(dtype):
    # Rows per packed vreg sublane group: 8 for 32-bit, 16 for bf16, 32 for 1B.
    itemsize = jnp.dtype(dtype).itemsize
    return 8 * max(1, 4 // itemsize)


def _vmem_capacity_bytes():
    try:
        info = pltpu.get_tpu_info()
        cap = getattr(info, "vmem_capacity_bytes", None)
        if cap:
            return int(cap)
    except Exception:
        pass
    # Conservative fallback (v7x has the smallest VMEM: 64 MiB per TC).
    return 64 * 1024 * 1024


def _pick_tile(rows, hidden, dtype, n_row_streams):
    """Pick a row tile: largest granule-multiple that fits the VMEM budget."""
    granule = _sublane_granule(dtype)
    itemsize = jnp.dtype(dtype).itemsize

    vmem_cap = _vmem_capacity_bytes()
    # Raise the scoped VMEM limit well above the default, keep headroom.
    vmem_limit = int(vmem_cap * 3 // 4)

    # Per-row VMEM cost: every big stream (x [+ residual] + out) is
    # double-buffered by the pipeline in the native dtype, plus ~3 f32-sized
    # live temporaries inside the body (upcast x, x*rstd*w, etc.).
    bytes_per_row = hidden * (2 * n_row_streams * itemsize + 3 * 4)
    budget = int(vmem_limit * 0.6)

    tm = (budget // max(bytes_per_row, 1)) // granule * granule
    tm = max(granule, min(tm, 1024))
    # Never make the tile bigger than the (granule-rounded) problem.
    tm = min(tm, _round_up(rows, granule))
    return tm, vmem_limit


# ---------------------------------------------------------------------------
# Wrapper
# ---------------------------------------------------------------------------

def rms_norm(x, weight, residual=None, eps=1e-5, donate_input=False):
    """RMSNorm over the last axis of x. Matches the PyTorch RMSNorm (bias=None).

    If donate_input=True the output is aliased onto x's buffer (caller must
    not reuse x afterwards); this removes one full HBM stream.
    """
    orig_shape = x.shape
    orig_dtype = x.dtype
    hidden = orig_shape[-1]
    rows = 1
    for d in orig_shape[:-1]:
        rows *= d

    x2 = x.reshape(rows, hidden)
    w2 = weight.reshape(1, hidden)
    r2 = residual.reshape(rows, hidden) if residual is not None else None

    n_row_streams = (3 if residual is not None else 2)  # x (+res) + out
    tm, vmem_limit = _pick_tile(rows, hidden, orig_dtype, n_row_streams)

    # Handle ragged row counts by padding up to a multiple of the tile.
    rows_padded = _round_up(rows, tm)
    if rows_padded != rows:
        pad = rows_padded - rows
        x2 = jnp.pad(x2, ((0, pad), (0, 0)))
        if r2 is not None:
            r2 = jnp.pad(r2, ((0, pad), (0, 0)))

    grid = (rows_padded // tm,)
    row_spec = pl.BlockSpec((tm, hidden), lambda i: (i, 0))
    w_spec = pl.BlockSpec((1, hidden), lambda i: (0, 0))

    compiler_params = pltpu.CompilerParams(
        dimension_semantics=("parallel",),  # lets v7x shard rows across 2 TCs
        vmem_limit_bytes=vmem_limit,
    )
    io_aliases = {0: 0} if donate_input else {}
    inv_hidden = 1.0 / float(hidden)

    if residual is None:
        out = pl.pallas_call(
            functools.partial(_rmsnorm_kernel, eps=eps, inv_hidden=inv_hidden),
            out_shape=jax.ShapeDtypeStruct((rows_padded, hidden), orig_dtype),
            grid_spec=pltpu.PrefetchScalarGridSpec(
                num_scalar_prefetch=0,
                grid=grid,
                in_specs=[row_spec, w_spec],
                out_specs=row_spec,
            ),
            compiler_params=compiler_params,
            input_output_aliases=io_aliases,
        )(x2, w2)
    else:
        out = pl.pallas_call(
            functools.partial(
                _rmsnorm_residual_kernel, eps=eps, inv_hidden=inv_hidden),
            out_shape=jax.ShapeDtypeStruct((rows_padded, hidden), orig_dtype),
            grid_spec=pltpu.PrefetchScalarGridSpec(
                num_scalar_prefetch=0,
                grid=grid,
                in_specs=[row_spec, row_spec, w_spec],
                out_specs=row_spec,
            ),
            compiler_params=compiler_params,
            input_output_aliases=io_aliases,
        )(x2, r2, w2)

    if rows_padded != rows:
        out = out[:rows]
    return out.reshape(orig_shape)


# ---------------------------------------------------------------------------
# Pure-JAX reference
# ---------------------------------------------------------------------------

def rms_norm_ref(x, weight, residual=None, eps=1e-5):
    dtype = x.dtype
    xf = x.astype(jnp.float32)
    if residual is not None:
        xf = xf + residual.astype(jnp.float32)
    rstd = jax.lax.rsqrt(jnp.mean(xf * xf, axis=-1, keepdims=True) + eps)
    return (xf * rstd * weight.astype(jnp.float32)).astype(dtype)


if __name__ == "__main__":
    batch, seq, hidden = 2, 8, 32
    eps = 1e-5

    key = jax.random.PRNGKey(0)
    kx, kw, kr = jax.random.split(key, 3)
    x = jax.random.normal(kx, (batch, seq, hidden), dtype=jnp.float32)
    residual = jax.random.normal(kr, (batch, seq, hidden), dtype=jnp.float32)
    # Deterministic "parameter" init (torch.empty is uninitialized; use normal).
    weight = jax.random.normal(kw, (hidden,), dtype=jnp.float32)

    # f32, no residual / with residual
    out = rms_norm(x, weight, eps=eps)
    out_res = rms_norm(x, weight, residual=residual, eps=eps)
    jax.block_until_ready(out)
    jax.block_until_ready(out_res)

    ref = rms_norm_ref(x, weight, eps=eps)
    ref_res = rms_norm_ref(x, weight, residual=residual, eps=eps)
    assert jnp.allclose(out, ref, atol=1e-5, rtol=1e-5)
    assert jnp.allclose(out_res, ref_res, atol=1e-5, rtol=1e-5)

    # bf16 path (sublane-packing / dtype handling check)
    x_bf16 = x.astype(jnp.bfloat16)
    out_bf16 = rms_norm(x_bf16, weight, eps=eps)
    jax.block_until_ready(out_bf16)
    ref_bf16 = rms_norm_ref(x_bf16, weight, eps=eps)
    assert jnp.allclose(out_bf16.astype(jnp.float32),
                        ref_bf16.astype(jnp.float32), atol=1e-2, rtol=1e-2)

    print("KERNEL_OK")
</pallas_src>

<mosaic_0001>
module attributes {stable_mosaic.version = 11 : i64} {
  func.func @_rmsnorm_kernel(%arg0: i32, %arg1: memref<16x32xf32, #tpu.memory_space<vmem>>, %arg2: memref<1x32xf32, #tpu.memory_space<vmem>>, %arg3: memref<16x32xf32, #tpu.memory_space<vmem>>) attributes {dimension_semantics = [#tpu.dimension_semantics<parallel>], iteration_bounds = array<i64: 1>, scalar_prefetch = 0 : i64, scratch_operands = 0 : i64, tpu.core_type = #tpu.core_type<tc>, window_params = [{transform_indices = @transform_0, window_bounds = array<i64: 16, 32>}, {pipeline_mode = #tpu.pipeline_mode<synchronous>, transform_indices = @transform_1, window_bounds = array<i64: 1, 32>}, {transform_indices = @transform_2, window_bounds = array<i64: 16, 32>}]} {
    %c0 = arith.constant 0 : index
    %c0_0 = arith.constant 0 : index
    %0 = vector.load %arg1[%c0, %c0_0] : memref<16x32xf32, #tpu.memory_space<vmem>>, vector<16x32xf32>
    %c0_1 = arith.constant 0 : index
    %c0_2 = arith.constant 0 : index
    %1 = vector.load %arg2[%c0_1, %c0_2] : memref<1x32xf32, #tpu.memory_space<vmem>>, vector<1x32xf32>
    %2 = arith.mulf %0, %0 : vector<16x32xf32>
    %cst = arith.constant dense<0.000000e+00> : vector<16xf32>
    %3 = vector.multi_reduction <add>, %2, %cst [1] : vector<16x32xf32> to vector<16xf32>
    %4 = vector.shape_cast %3 : vector<16xf32> to vector<16x1xf32>
    %cst_3 = arith.constant 3.125000e-02 : f32
    %5 = vector.broadcast %cst_3 : f32 to vector<16x1xf32>
    %6 = arith.mulf %4, %5 : vector<16x1xf32>
    %cst_4 = arith.constant 9.99999974E-6 : f32
    %7 = vector.broadcast %cst_4 : f32 to vector<16x1xf32>
    %8 = arith.addf %6, %7 : vector<16x1xf32>
    %9 = math.rsqrt %8 : vector<16x1xf32>
    %10 = vector.broadcast %9 : vector<16x1xf32> to vector<16x32xf32>
    %11 = arith.mulf %0, %10 : vector<16x32xf32>
    %12 = vector.broadcast %1 : vector<1x32xf32> to vector<16x32xf32>
    %13 = arith.mulf %11, %12 : vector<16x32xf32>
    %c0_5 = arith.constant 0 : index
    %c0_6 = arith.constant 0 : index
    %14 = vector.load %arg3[%c0_5, %c0_6] : memref<16x32xf32, #tpu.memory_space<vmem>>, vector<16x32xf32>
    tpu.vector_store %arg3[%c0_5, %c0_6], %13 {strides = array<i32>} : memref<16x32xf32, #tpu.memory_space<vmem>>, vector<16x32xf32>,
    return
  }
  func.func @transform_0(%arg0: i32) -> (i32, i32) {
    %c0_i32 = arith.constant 0 : i32
    %c0_i32_0 = arith.constant 0 : i32
    return %arg0, %c0_i32 : i32, i32
  }
  func.func @transform_1(%arg0: i32) -> (i32, i32) {
    %c0_i32 = arith.constant 0 : i32
    %c0_i32_0 = arith.constant 0 : i32
    %c0_i32_1 = arith.constant 0 : i32
    return %c0_i32, %c0_i32_0 : i32, i32
  }
  func.func @transform_2(%arg0: i32) -> (i32, i32) {
    %c0_i32 = arith.constant 0 : i32
    %c0_i32_0 = arith.constant 0 : i32
    return %arg0, %c0_i32 : i32, i32
  }
}

</mosaic_0001>

<bundles_post_ra>
// kernel: tpu_custom_call.1
= control target key start
LH: loop header
LB: loop body
LE: loop exit
PB: predicated region body
PF: predicated region fallthrough
CT: control target
= control target key end

     0   :  { %7 = vsyncpa [#allocation3], 0  ;;  %s164_s0 = inlined_call_operand.hbm [shape: f32[16,32], index: 0, kind: input, shape index: {}]   ;;  %s165_s1 = inlined_call_operand.vmem [shape: f32[1,32], index: 1, kind: input, shape index: {}]   ;;  %s166_s2 = inlined_call_operand.hbm [shape: f32[16,32], index: 2, kind: output, shape index: {}]  }
   0x1   :  { %8 = vsyncpa [#allocation4], 0  ;;  %s126_s9 = smov [#allocation2]  }
   0x2   :  { %s14_s10 = sshll.u32 %s126_s9, 4  ;;  %s15_s10 = int_to_ptr.vmem [resolvable:$true] %s14_s10 }
   0x3   :  { %s90_s11 = scalar_lea.vmem %s15_s10, 256  ;;  %p95_p1 = scmp.lt.s32.totalorder %s15_s10, %s15_s10 }
   0x4   :  { %p91_p0 = scmp.ne.s32.totalorder %s15_s10, %s90_s11  ;;  %p96_p2 = scmp.lt.s32.totalorder %s90_s11, %s90_s11 }
   0x6   :  { %p97_p3 = por %p96_p2, %p95_p1 }
   0x8   :  { %p98_p4 = pnand %p97_p3, %p91_p0 }
   0xa   :  { %101 = shalt.err (!%p98_p4)
}
   0xb   :  { %s127_s12 = smov 128   ;;  %s128_s13 = smov 8  }
   0xc   :  { %20 = dma.hbm_to_vmem [thread:$0]  %s164_s0, 256, %s15_s10, [#allocation3], %s127_s12, %s127_s12, %s128_s13  }
   0xd   :  { %122 = dma.done.wait [#allocation3], 256  }
   0xe   :  { %123 = vsyncadd [#allocation3], 4294967040  ;;  %v26_v0 = vld [vmem:[#allocation2] sm:$0xff]  ;;  %vm31_vm0 = vcmask 261120   ;;  %v27_v1 = vld [vmem:[#allocation2 + $0x8] sm:$0xff]  ;;  %s129_s17 = smov [#allocation5]  }
   0xf   :  { %v29_v2 = vmul.f32 %v26_v0, %v26_v0  ;;  %v30_v3 = vmul.f32 %v27_v1, %v27_v1  ;;  %v73_v13 = vld [vmem:[%s165_s1] ss:$0 sm:$0xff]  ;;  %s61_s18 = sshll.u32 %s129_s17, 4  ;;  %s62_s18 = int_to_ptr.vmem [resolvable:$true] %s61_s18 }
  0x10   :  { %s102_s19 = scalar_lea.vmem %s62_s18, 256  ;;  %p107_p6 = scmp.lt.s32.totalorder %s62_s18, %s62_s18 }
  0x11   :  { %v32_v4 = vsel %vm31_vm0, %v29_v2, 0.0  ;;  %v35_v5 = vsel %vm31_vm0, %v30_v3, 0.0  ;;  %p103_p5 = scmp.ne.s32.totalorder %s62_s18, %s102_s19  ;;  %p108_p7 = scmp.lt.s32.totalorder %s102_s19, %s102_s19 }
  0x12   :  { %33 = vadd.xlane.f32.xlu0 %v32_v4 }
  0x13   :  { %p109_p8 = por %p108_p7, %p107_p6 }
  0x15   :  { %p110_p9 = pnand %p109_p8, %p103_p5 }
  0x16   :  { %36 = vadd.xlane.f32.xlu0 %v35_v5 }
  0x9b   :  { %v34_v6 = vpop.xlane.xlu0 %33 }
  0x9c   :  { %v38_v7 = vmul.f32 0.03125, %v34_v6 }
  0x9e   :  { %v40_v8 = vadd.f32 1e-05, %v38_v7 }
  0x9f   :  { %v37_v9 = vpop.xlane.xlu0 %36 }
  0xa0   :  { %78 = vrsqrt.f32 %v40_v8  ;;  %v39_v10 = vmul.f32 0.03125, %v37_v9 }
  0xa2   :  { %v41_v11 = vadd.f32 1e-05, %v39_v10 }
  0xa4   :  { %80 = vrsqrt.f32 %v41_v11 }
  0xad   :  { %v79_v12 = vpop.eup %78 }
  0xae   :  { %v44_v14 = vmul.f32 %v79_v12, %v26_v0 }
  0xb0   :  { %v52_v15 = vmul.f32 %v73_v13, %v44_v14 }
  0xb1   :  { %v81_v16 = vpop.eup %80 }
  0xb2   :  { %v45_v17 = vmul.f32 %v81_v16, %v27_v1  ;;  %54 = vst.msk [vmem:[#allocation5] sm:$0xff] %vm31_vm0, %v52_v15 }
  0xb4   :  { %v53_v18 = vmul.f32 %v73_v13, %v45_v17 }
  0xb6   :  { %55 = vst.msk [vmem:[#allocation5 + $0x8] sm:$0xff] %vm31_vm0, %v53_v18 }
  0xb7   :  { %113 = shalt.err (!%p110_p9)
}
  0xb8   :  { %67 = dma.vmem_to_hbm [thread:$0]  %s62_s18, 256, %s166_s2, [#allocation4], %s127_s12, %s127_s12, %s128_s13  }
  0xb9   :  { %124 = dma.done.wait [#allocation4], 256  }
  0xba   :  { %125 = vsyncadd [#allocation4], 4294967040 }
  0xbb   :  { %71 = vsyncpa [#allocation3], 1 }
  0xbc   :  { %72 = vsyncpa [#allocation4], 1 }

</bundles_post_ra>
